<compile_context>
chip_gen: v6e
topology: v6e:2x2x1
jax: 0.10.0
libtpu: 0.0.40
codegen_flags: <defaults>
</compile_context>

<pallas_src>
import functools

import jax
import jax.numpy as jnp
from jax.experimental import pallas as pl
from jax.experimental.pallas import tpu as pltpu

LANES = 128
SUBLANES = 8                 # f32 sublane tile
STRIP = 64                   # rows per inner reduction step; multiple of the
                             # sublane tile for f32(8)/bf16(16)/int8(32) packing
MAX_BLOCK_ROWS = 4096        # 2 MiB f32 per block; x2 double-buffering = 4 MiB
SINGLE_BLOCK_MAX_ROWS = 512  # <= 64K elements: single-shot, in-kernel scalar out


def _block_ssq_partial(pred_ref, c, nrows):
    """Sum of (0.5*x - c)**2 over pred_ref[:nrows, :], as an (8,128) f32 partial.

    Consumes the block in (STRIP, 128) strips inside a fori_loop so every
    intermediate stays in vregs (no big VMEM temporaries).  `nrows` is a static
    multiple of the input's sublane tile -> no element masking needed.
    """
    # Hoist the scalar->vector broadcast of c out of the loop (no in-loop CSE).
    c_strip = jnp.full((STRIP, LANES), c, dtype=jnp.float32)

    def strip_ssq(off, size):
        p = pred_ref[pl.ds(off, size), :].astype(jnp.float32)
        # target = 0.5*pred + c  =>  diff = pred - target = 0.5*pred - c
        d = 0.5 * p - (c_strip if size == STRIP else c_strip[:size])
        sq = d * d
        if size > SUBLANES:
            # sublane-group fold to one (8,128) vreg (pure VPU adds)
            sq = jnp.sum(sq.reshape(size // SUBLANES, SUBLANES, LANES), axis=0)
        return sq

    nfull, rem = divmod(nrows, STRIP)
    acc = jnp.zeros((SUBLANES, LANES), jnp.float32)
    if nfull > 0:
        def body(g, a):
            off = pl.multiple_of(g * STRIP, STRIP)
            return a + strip_ssq(off, STRIP)
        acc = jax.lax.fori_loop(0, nfull, body, acc, unroll=min(nfull, 8))
    if rem > 0:                       # static remainder, still a sublane multiple
        acc = acc + strip_ssq(nfull * STRIP, rem)
    return acc


def _fused_mse_kernel(c_ref, pred_ref, out_ref, *, block_rows, last_rows,
                      num_blocks):
    """Per grid step: sum of squared errors of one prediction block.

    num_blocks == 1 : full reduction in-kernel -> scalar (1,1) SMEM output.
    num_blocks  > 1 : (8,128) lane-dense f32 partial per block (wrapper sums).
    """
    c = c_ref[0]                                   # scalar from SMEM
    if num_blocks == 1:
        part = _block_ssq_partial(pred_ref, c, last_rows)
        out_ref[0, 0] = jnp.sum(part)              # scalar SMEM output
    elif last_rows == block_rows:
        # rows divides evenly: every step runs the same mask-free fast path.
        out_ref[...] = _block_ssq_partial(pred_ref, c, block_rows)
    else:
        # Ragged last block: its padded rows are undefined; statically slice
        # them off (no per-element mask), gated behind pl.when.
        i = pl.program_id(0)

        @pl.when(i < num_blocks - 1)
        def _():
            out_ref[...] = _block_ssq_partial(pred_ref, c, block_rows)

        @pl.when(i == num_blocks - 1)
        def _():
            out_ref[...] = _block_ssq_partial(pred_ref, c, last_rows)


def _round_up(x, m):
    return ((x + m - 1) // m) * m


def pallas_fused_mse(predictions, c_scalar):
    """mean((pred - (0.5*pred + c))**2), with the surrogate target fused in-kernel."""
    n = predictions.shape[0]
    assert 1 <= n < 2 ** 31
    if jnp.dtype(predictions.dtype).itemsize > 4:      # f64 is not TPU-native
        predictions = predictions.astype(jnp.float32)
    itemsize = jnp.dtype(predictions.dtype).itemsize
    sub = SUBLANES * (4 // itemsize)                    # 8 f32 / 16 bf16 / 32 int8
    chunk = sub * LANES

    c32 = jnp.asarray(c_scalar, dtype=jnp.float32).reshape(())
    n_f32 = jnp.float32(n)

    # Sub-chunk tail (< sub*128 elements) in plain XLA: no jnp.pad copy of the
    # whole array and no in-kernel element mask.
    n_main = (n // chunk) * chunk
    if n_main < n:
        t = predictions[n_main:].astype(jnp.float32)
        dt_ = 0.5 * t - c32
        tail_ssq = jnp.sum(dt_ * dt_)
    else:
        tail_ssq = jnp.float32(0.0)

    if n_main == 0:
        return tail_ssq / n_f32

    rows = n_main // LANES                              # static multiple of `sub`
    main = predictions if n_main == n else predictions[:n_main]
    pred2d = main.reshape(rows, LANES)                  # lane-dense, zero-copy when aligned
    c_arr = c32.reshape(1)                              # (1,) scalar operand in SMEM

    smem_spec = pl.BlockSpec(memory_space=pltpu.MemorySpace.SMEM)

    if rows <= SINGLE_BLOCK_MAX_ROWS:
        # Realistic IpoptLoss sizes (a few thousand vars): one block, reduction
        # folded in-kernel, scalar SMEM output -> no second reduce over partials.
        kernel = functools.partial(_fused_mse_kernel, block_rows=rows,
                                   last_rows=rows, num_blocks=1)
        ssq = pl.pallas_call(
            kernel,
            out_shape=jax.ShapeDtypeStruct((1, 1), jnp.float32),
            grid=(1,),
            in_specs=[smem_spec,
                      pl.BlockSpec((rows, LANES), lambda i: (0, 0))],
            out_specs=smem_spec,
            compiler_params=pltpu.CompilerParams(
                dimension_semantics=("arbitrary",)),
        )(c_arr, pred2d)[0, 0]
    else:
        if rows <= 2 * MAX_BLOCK_ROWS:
            # Guarantee >= 2 grid steps so both v7x TensorCores stream halves of
            # the array; harmless on single-TC v5e/v6e.
            block_rows = min(MAX_BLOCK_ROWS, _round_up(pl.cdiv(rows, 2), STRIP))
        else:
            block_rows = MAX_BLOCK_ROWS
        num_blocks = pl.cdiv(rows, block_rows)
        last_rows = rows - (num_blocks - 1) * block_rows  # static multiple of `sub`

        kernel = functools.partial(_fused_mse_kernel, block_rows=block_rows,
                                   last_rows=last_rows, num_blocks=num_blocks)
        partials = pl.pallas_call(
            kernel,
            out_shape=jax.ShapeDtypeStruct((num_blocks * SUBLANES, LANES),
                                           jnp.float32),
            grid=(num_blocks,),
            in_specs=[smem_spec,
                      pl.BlockSpec((block_rows, LANES), lambda i: (i, 0))],
            out_specs=pl.BlockSpec((SUBLANES, LANES), lambda i: (i, 0)),
            compiler_params=pltpu.CompilerParams(
                dimension_semantics=("parallel",)),      # no carried state
        )(c_arr, pred2d)
        ssq = jnp.sum(partials)                          # tiny epilogue reduce

    return (ssq + tail_ssq) / n_f32


def ipopt_loss_forward(predictions, inputs, n_obstacles):
    """JAX/Pallas equivalent of IpoptLoss.forward.

    predictions: f[n_vars]            -- solver warm-start / network output
    inputs:      f32[3 * n_obstacles] -- obstacle parameters (p[4:4+3*n_obsts])
    returns:     scalar f32 MSE(predictions, target)
    """
    assert inputs.shape[0] == 3 * n_obstacles
    # TODO(synk): the real target is problem.solve_limited() (an IPOPT/CasADi NLP
    # solve seeded with `predictions`); no Pallas equivalent exists, so the
    # deterministic surrogate target 0.5*pred + 0.1*mean(inputs) is fused into
    # the kernel instead (loss value is not numerically equal to the original).
    c = jax.lax.stop_gradient(0.1 * jnp.mean(inputs.astype(jnp.float32)))
    # TODO(synk): training use would need a custom_vjp for the pallas_call
    # (d/dpred = 2*(pred - target)/n); only the forward value is implemented.
    return pallas_fused_mse(predictions, c)


if __name__ == "__main__":
    n_obstacles = 3          # cfg.n_obstacles

    def reference(pred, obs):
        c = 0.1 * jnp.mean(obs.astype(jnp.float32))
        d = 0.5 * pred.astype(jnp.float32) - c
        return jnp.mean(d * d)

    loss_fn = jax.jit(ipopt_loss_forward, static_argnums=2)

    test_cases = [
        (2048, jnp.float32),     # aligned, single block, in-kernel scalar reduce
        (1500, jnp.float32),     # single block + <1024-element XLA tail (no pad)
        (150_000, jnp.float32),  # multi-block grid, ragged last block + tail
        (500, jnp.float32),      # below one chunk -> pure XLA fallback
        (4096, jnp.bfloat16),    # native sub-32-bit streaming (halved DMA bytes)
    ]

    key = jax.random.PRNGKey(0)
    for idx, (n_vars, dt) in enumerate(test_cases):
        k_pred, k_in = jax.random.split(jax.random.fold_in(key, idx))
        predictions = jax.random.normal(k_pred, (n_vars,), dtype=jnp.float32)
        predictions = predictions.astype(dt)
        obstacle_inputs = jax.random.normal(
            k_in, (3 * n_obstacles,), dtype=jnp.float32)

        loss = jax.block_until_ready(
            loss_fn(predictions, obstacle_inputs, n_obstacles))
        ref = jax.block_until_ready(reference(predictions, obstacle_inputs))
        assert jnp.allclose(loss, ref, rtol=1e-4, atol=1e-5), (
            n_vars, dt, loss, ref)

    print("KERNEL_OK")
</pallas_src>

<mosaic_0001>
module attributes {stable_mosaic.version = 11 : i64} {
  func.func @_fused_mse_kernel(%arg0: i32, %arg1: memref<1xf32, #tpu.memory_space<smem>>, %arg2: memref<16x128xf32, #tpu.memory_space<vmem>>, %arg3: memref<1x1xf32, #tpu.memory_space<smem>>) attributes {dimension_semantics = [#tpu.dimension_semantics<arbitrary>], iteration_bounds = array<i64: 1>, scalar_prefetch = 0 : i64, scratch_operands = 0 : i64, tpu.core_type = #tpu.core_type<tc>, window_params = [{transform_indices = @transform_0, window_bounds = array<i64: 1>}, {pipeline_mode = #tpu.pipeline_mode<synchronous>, transform_indices = @transform_1, window_bounds = array<i64: 16, 128>}, {transform_indices = @transform_2, window_bounds = array<i64: 1, 1>}]} {
    %c0 = arith.constant 0 : index
    %0 = memref.load %arg1[%c0] : memref<1xf32, #tpu.memory_space<smem>>
    %1 = vector.broadcast %0 : f32 to vector<64x128xf32>
    %cst = arith.constant 0.000000e+00 : f32
    %2 = vector.broadcast %cst : f32 to vector<8x128xf32>
    %c0_0 = arith.constant 0 : index
    %c0_1 = arith.constant 0 : index
    %3 = vector.load %arg2[%c0_0, %c0_1] : memref<16x128xf32, #tpu.memory_space<vmem>>, vector<16x128xf32>
    %cst_2 = arith.constant 5.000000e-01 : f32
    %4 = vector.broadcast %cst_2 : f32 to vector<16x128xf32>
    %5 = arith.mulf %4, %3 : vector<16x128xf32>
    %6 = vector.extract_strided_slice %1 {offsets = [0, 0], sizes = [16, 128], strides = [1, 1]} : vector<64x128xf32> to vector<16x128xf32>
    %7 = arith.subf %5, %6 : vector<16x128xf32>
    %8 = arith.mulf %7, %7 : vector<16x128xf32>
    %9 = vector.shape_cast %8 : vector<16x128xf32> to vector<2x8x128xf32>
    %cst_3 = arith.constant dense<0.000000e+00> : vector<8x128xf32>
    %10 = vector.multi_reduction <add>, %9, %cst_3 [0] : vector<2x8x128xf32> to vector<8x128xf32>
    %11 = arith.addf %2, %10 : vector<8x128xf32>
    %12 = vector.shape_cast %11 : vector<8x128xf32> to vector<1x8x128xf32>
    %cst_4 = arith.constant dense<0.000000e+00> : vector<1xf32>
    %13 = vector.multi_reduction <add>, %12, %cst_4 [1, 2] : vector<1x8x128xf32> to vector<1xf32>
    %14 = vector.shape_cast %13 : vector<1xf32> to vector<1x1x1xf32>
    %15 = vector.extract %14[0, 0, 0] : f32 from vector<1x1x1xf32>
    %c0_5 = arith.constant 0 : index
    %c0_6 = arith.constant 0 : index
    %16 = memref.load %arg3[%c0_5, %c0_6] : memref<1x1xf32, #tpu.memory_space<smem>>
    memref.store %15, %arg3[%c0_5, %c0_6] : memref<1x1xf32, #tpu.memory_space<smem>>
    return
  }
  func.func @transform_0(%arg0: i32) -> i32 {
    %c0_i32 = arith.constant 0 : i32
    %c0_i32_0 = arith.constant 0 : i32
    return %c0_i32 : i32
  }
  func.func @transform_1(%arg0: i32) -> (i32, i32) {
    %c0_i32 = arith.constant 0 : i32
    %c0_i32_0 = arith.constant 0 : i32
    %c0_i32_1 = arith.constant 0 : i32
    return %c0_i32, %c0_i32_0 : i32, i32
  }
  func.func @transform_2(%arg0: i32) -> (i32, i32) {
    %c0_i32 = arith.constant 0 : i32
    %c0_i32_0 = arith.constant 0 : i32
    %c0_i32_1 = arith.constant 0 : i32
    return %c0_i32, %c0_i32_0 : i32, i32
  }
}

</mosaic_0001>

<bundles_post_ra>
// kernel: ipopt_loss_forward.1
= control target key start
LH: loop header
LB: loop body
LE: loop exit
PB: predicated region body
PF: predicated region fallthrough
CT: control target
= control target key end

     0   :  { %8 = vsyncpa [#allocation4], 0  ;;  %s130_s0 = inlined_call_operand.<no memory space> [shape: f32[1], index: 0, kind: input, shape index: {}]   ;;  %s131_s1 = inlined_call_operand.hbm [shape: f32[16,128], index: 1, kind: input, shape index: {}]   ;;  %s132_s2 = inlined_call_operand.hbm [shape: f32[1,1], index: 2, kind: output, shape index: {}]  }
   0x1   :  { %9 = vsyncpa [#allocation5], 0  ;;  %s102_s9 = smov [#allocation3]  }
   0x2   :  { %s17_s10 = sshll.u32 %s102_s9, 4  ;;  %s18_s10 = int_to_ptr.vmem [resolvable:$true] %s17_s10 }
   0x3   :  { %s78_s11 = scalar_lea.vmem %s18_s10, 256  ;;  %p83_p1 = scmp.lt.s32.totalorder %s18_s10, %s18_s10 }
   0x4   :  { %p79_p0 = scmp.ne.s32.totalorder %s18_s10, %s78_s11  ;;  %p84_p2 = scmp.lt.s32.totalorder %s78_s11, %s78_s11 }
   0x6   :  { %p85_p3 = por %p84_p2, %p83_p1 }
   0x8   :  { %p86_p4 = pnand %p85_p3, %p79_p0 }
   0xa   :  { %89 = shalt.err (!%p86_p4)
}
   0xb   :  { %s103_s12 = smov 128   ;;  %s104_s13 = smov 8  }
   0xc   :  { %23 = dma.hbm_to_vmem [thread:$0]  %s131_s1, 256, %s18_s10, [#allocation4], %s103_s12, %s103_s12, %s104_s13  }
   0xd   :  { %98 = dma.done.wait [#allocation4], 256  }
   0xe   :  { %99 = vsyncadd [#allocation4], 4294967040  ;;  %v28_v0 = vld [vmem:[#allocation3] sm:$0xff]  ;;  %v29_v1 = vld [vmem:[#allocation3 + $0x8] sm:$0xff]  ;;  %v32_v2 = vstv %s130_s0  ;;  %s105_s18 = smov [#allocation6]  }
   0xf   :  { %v30_v3 = vmul.f32 0.5, %v28_v0  ;;  %v31_v4 = vmul.f32 0.5, %v29_v1 }
  0x11   :  { %v33_v5 = vsub.f32 %v30_v3, %v32_v2  ;;  %v34_v6 = vsub.f32 %v31_v4, %v32_v2 }
  0x13   :  { %v35_v7 = vmul.f32 %v33_v5, %v33_v5  ;;  %v36_v8 = vmul.f32 %v34_v6, %v34_v6 }
  0x15   :  { %v37_v9 = vadd.f32 %v36_v8, %v35_v7 }
  0x17   :  { %39 = vadd.xlane.f32.xlu0 %v37_v9 }
  0xa0   :  { %v40_v10 = vpop.xlane.xlu0 %39 }
  0xa1   :  { %v41_v11 = vrot.slane %v40_v10, 4 }
  0xa3   :  { %v42_v12 = vadd.f32 %v41_v11, %v40_v10 }
  0xa5   :  { %v43_v13 = vrot.slane %v42_v12, 2 }
  0xa7   :  { %v44_v14 = vadd.f32 %v43_v13, %v42_v12 }
  0xa9   :  { %v45_v15 = vrot.slane %v44_v14, 1 }
  0xab   :  { %v46_v16 = vadd.f32 %v45_v15, %v44_v14 }
  0xad   :  { %64 = vpush %v46_v16 }
  0xde   :  { %s65_s1 = spop %64 }
  0xdf   :  { %49 = sst [smem:[#allocation6]] %s65_s1 }
  0xe0   :  { %57 = dma.smem_to_hbm %s105_s18, 16, %s132_s2, [#allocation5]  }
  0xe1   :  { %100 = dma.done.wait [#allocation5], 16  }
  0xe2   :  { %101 = vsyncadd [#allocation5], 4294967280 }
  0xe3   :  { %61 = sfence }
  0xe4   :  { %62 = vsyncpa [#allocation4], 1 }
  0xe5   :  { %63 = vsyncpa [#allocation5], 1 }

</bundles_post_ra>
